<compile_context>
chip_gen: v7x
topology: tpu7x:2x2x1
jax: 0.10.0
libtpu: 0.0.40
codegen_flags: <defaults>
</compile_context>

<pallas_src>
import math

import numpy as np
import jax
import jax.numpy as jnp
from jax.experimental import pallas as pl
from jax.experimental.pallas import tpu as pltpu

LOG_STD_MAX = 2.0
LOG_STD_MIN = -20.0


def _make_actor_kernel(*, max_action, forced_exploration, log_forced_exploration,
                       deterministic, with_logprob):
    needs_std = (not deterministic) or with_logprob
    needs_noise = not deterministic

    def kernel(*refs):
        refs = list(refs)
        x_ref = refs.pop(0)
        w1_ref, b1_ref = refs.pop(0), refs.pop(0)
        w2_ref, b2_ref = refs.pop(0), refs.pop(0)
        w3_ref, b3_ref = refs.pop(0), refs.pop(0)
        wmu_ref, bmu_ref = refs.pop(0), refs.pop(0)
        if needs_std:
            wls_ref, bls_ref = refs.pop(0), refs.pop(0)
        noise_ref = refs.pop(0) if needs_noise else None
        pi_ref = refs.pop(0)
        logp_ref = refs.pop(0) if with_logprob else None

        def dense(a, w_ref, b_ref):
            # cast activation to the (possibly bf16) weight dtype right before the
            # MXU; accumulate in f32.
            a = a.astype(w_ref.dtype)
            return jnp.dot(a, w_ref[...],
                           preferred_element_type=jnp.float32) + b_ref[...]

        x = x_ref[...]
        h = jnp.maximum(dense(x, w1_ref, b1_ref), 0.0)
        h = jnp.maximum(dense(h, w2_ref, b2_ref), 0.0)
        h = jnp.maximum(dense(h, w3_ref, b3_ref), 0.0)

        mu = dense(h, wmu_ref, bmu_ref)

        if needs_std:
            log_std = dense(h, wls_ref, bls_ref) - 1.0
            log_std = jnp.clip(log_std, LOG_STD_MIN, LOG_STD_MAX)

        if deterministic:
            pi_action = mu
        else:
            eps = noise_ref[...]
            std = jnp.exp(log_std) * forced_exploration
            pi_action = mu + std * eps

        if with_logprob:
            # Normal(mu, std).log_prob(pi_action).sum(-1)
            # pi_action - mu == std*eps by construction -> quad term is -0.5*eps^2
            if deterministic:
                quad = jnp.zeros_like(mu)
            else:
                quad = -0.5 * (eps * eps)
            log_scale = log_std + log_forced_exploration
            gauss = quad - log_scale - 0.5 * math.log(2.0 * math.pi)
            logp_pi = jnp.sum(gauss, axis=-1, keepdims=True)
            # tanh-squash correction: 2*(log 2 - a - softplus(-2a)) summed over actions
            softplus_neg2a = jnp.logaddexp(-2.0 * pi_action, 0.0)
            corr = 2.0 * (math.log(2.0) - pi_action - softplus_neg2a)
            logp_pi = logp_pi - jnp.sum(corr, axis=-1, keepdims=True)
            logp_ref[...] = logp_pi.astype(logp_ref.dtype)

        pi_ref[...] = (jnp.tanh(pi_action) * max_action).astype(pi_ref.dtype)

    return kernel


def actor_forward(params, x, noise=None, *, max_action=1.0, with_logprob=False,
                  deterministic=False, forced_exploration=1.0,
                  weight_dtype=jnp.bfloat16, batch_tile=512):
    needs_std = (not deterministic) or with_logprob
    needs_noise = not deterministic
    if needs_noise and noise is None:
        raise ValueError("noise (eps for rsample) required unless deterministic=True")

    B, in_dim = x.shape
    A = params["wmu"].shape[1]

    # ---- parameter prep (glue): cast weights once (bf16 by default), f32 biases ----
    wd = weight_dtype
    w1, b1 = params["w1"].astype(wd), params["b1"].astype(jnp.float32)
    w2, b2 = params["w2"].astype(wd), params["b2"].astype(jnp.float32)
    w3, b3 = params["w3"].astype(wd), params["b3"].astype(jnp.float32)
    wmu, bmu = params["wmu"].astype(wd), params["bmu"].astype(jnp.float32)
    if needs_std:
        wls, bls = params["wls"].astype(wd), params["bls"].astype(jnp.float32)

    # ---- batch tiling (weights stay resident; batch axis is "parallel") ----
    if B <= batch_tile:
        TB, Bp = B, B
    else:
        TB = batch_tile  # multiple of 8 (and 128) -> clean sublane/MXU mapping
        Bp = -(-B // TB) * TB
    xin = x.astype(jnp.float32)
    if Bp != B:
        xin = jnp.pad(xin, ((0, Bp - B), (0, 0)))

    operands = [xin, w1, b1, w2, b2, w3, b3, wmu, bmu]
    if needs_std:
        operands += [wls, bls]
    if needs_noise:
        nin = noise.astype(jnp.float32)
        if Bp != B:
            nin = jnp.pad(nin, ((0, Bp - B), (0, 0)))
        operands.append(nin)

    nb = Bp // TB

    def batch_spec(feat):
        return pl.BlockSpec((TB, feat), lambda i: (i, 0))

    def const_spec(arr):
        return pl.BlockSpec(arr.shape, lambda i: (0, 0))

    in_specs = [batch_spec(in_dim),
                const_spec(w1), const_spec(b1),
                const_spec(w2), const_spec(b2),
                const_spec(w3), const_spec(b3),
                const_spec(wmu), const_spec(bmu)]
    if needs_std:
        in_specs += [const_spec(wls), const_spec(bls)]
    if needs_noise:
        in_specs.append(batch_spec(A))

    out_shapes = [jax.ShapeDtypeStruct((Bp, A), jnp.float32)]
    out_specs = [batch_spec(A)]
    if with_logprob:
        # TODO(synk): logp stays a 1-lane output (masked store); fold into a
        # lane-dense slab if this ever becomes the bottleneck at large batch.
        out_shapes.append(jax.ShapeDtypeStruct((Bp, 1), jnp.float32))
        out_specs.append(batch_spec(1))

    # guard forced_exploration <= 0 outside the kernel
    log_fe = math.log(float(forced_exploration)) if with_logprob else 0.0

    kernel = _make_actor_kernel(
        max_action=float(max_action),
        forced_exploration=float(forced_exploration),
        log_forced_exploration=float(log_fe),
        deterministic=bool(deterministic),
        with_logprob=bool(with_logprob),
    )

    outs = pl.pallas_call(
        kernel,
        out_shape=tuple(out_shapes),
        grid=(nb,),
        in_specs=in_specs,
        out_specs=tuple(out_specs),
        compiler_params=pltpu.CompilerParams(
            dimension_semantics=("parallel",)),
    )(*operands)

    pi = outs[0][:B]
    if with_logprob:
        return pi, outs[1][:B, 0]
    return pi


def actor_reference(params, x, noise, *, max_action=1.0, with_logprob=False,
                    deterministic=False, forced_exploration=1.0,
                    weight_dtype=jnp.bfloat16):
    """Pure-JAX reference using the same mixed-precision path as the kernel."""
    wd = weight_dtype

    def dense(a, w, b):
        return jnp.dot(a.astype(wd), w.astype(wd),
                       preferred_element_type=jnp.float32) + b.astype(jnp.float32)

    h = jax.nn.relu(dense(x, params["w1"], params["b1"]))
    h = jax.nn.relu(dense(h, params["w2"], params["b2"]))
    h = jax.nn.relu(dense(h, params["w3"], params["b3"]))
    mu = dense(h, params["wmu"], params["bmu"])
    log_std = dense(h, params["wls"], params["bls"]) - 1.0
    log_std = jnp.clip(log_std, LOG_STD_MIN, LOG_STD_MAX)
    std = jnp.exp(log_std) * forced_exploration
    pi_action = mu if deterministic else mu + std * noise
    if with_logprob:
        logp = (-((pi_action - mu) ** 2) / (2.0 * std * std)
                - jnp.log(std) - 0.5 * jnp.log(2.0 * jnp.pi))
        logp_pi = logp.sum(-1)
        corr = 2.0 * (jnp.log(2.0) - pi_action - jax.nn.softplus(-2.0 * pi_action))
        logp_pi = logp_pi - corr.sum(-1)
    pi = jnp.tanh(pi_action) * max_action
    if with_logprob:
        return pi, logp_pi
    return pi


def init_params(key, in_dim, action_dim, hidden=256):
    """PyTorch nn.Linear default init: U(-1/sqrt(fan_in), +1/sqrt(fan_in))."""
    def linear(k, fan_in, fan_out):
        kw, kb = jax.random.split(k)
        bound = 1.0 / jnp.sqrt(jnp.float32(fan_in))
        w = jax.random.uniform(kw, (fan_in, fan_out), jnp.float32, -bound, bound)
        b = jax.random.uniform(kb, (1, fan_out), jnp.float32, -bound, bound)
        return w, b

    k1, k2, k3, k4, k5 = jax.random.split(key, 5)
    w1, b1 = linear(k1, in_dim, hidden)
    w2, b2 = linear(k2, hidden, hidden)
    w3, b3 = linear(k3, hidden, hidden)
    wmu, bmu = linear(k4, hidden, action_dim)
    wls, bls = linear(k5, hidden, action_dim)
    return dict(w1=w1, b1=b1, w2=w2, b2=b2, w3=w3, b3=b3,
                wmu=wmu, bmu=bmu, wls=wls, bls=bls)


if __name__ == "__main__":
    # env_params: obs=10, goal=3, action=4, action_max=1.0
    env_params = {"obs": 10, "goal": 3, "action": 4, "action_max": 1.0}
    B = 2
    in_dim = env_params["obs"] + env_params["goal"]
    A = env_params["action"]

    root = jax.random.PRNGKey(0)
    kp, kx, kn = jax.random.split(root, 3)
    params = init_params(kp, in_dim, A)
    x = jax.random.normal(kx, (B, in_dim), jnp.float32)
    noise = jax.random.normal(kn, (B, A), jnp.float32)  # eps for rsample

    # 1) stochastic path with log-prob
    pi, logp = actor_forward(params, x, noise,
                             max_action=env_params["action_max"],
                             with_logprob=True, deterministic=False,
                             forced_exploration=1.0)
    # 2) stochastic path, no log-prob (logp block skipped inside the kernel)
    pi_s = actor_forward(params, x, noise,
                         max_action=env_params["action_max"],
                         with_logprob=False, deterministic=False)
    # 3) deterministic path (mu-only head; no noise DMA, no log_std matmul)
    pi_d = actor_forward(params, x,
                         max_action=env_params["action_max"],
                         with_logprob=False, deterministic=True)
    jax.block_until_ready((pi, logp, pi_s, pi_d))

    # correctness vs pure-JAX reference (same bf16 weight / f32 accumulation path)
    ref_pi, ref_logp = actor_reference(params, x, noise,
                                       max_action=env_params["action_max"],
                                       with_logprob=True, deterministic=False)
    ref_pi_d = actor_reference(params, x, noise,
                               max_action=env_params["action_max"],
                               with_logprob=False, deterministic=True)
    np.testing.assert_allclose(np.asarray(pi), np.asarray(ref_pi), rtol=2e-2, atol=2e-2)
    np.testing.assert_allclose(np.asarray(logp), np.asarray(ref_logp), rtol=2e-2, atol=2e-2)
    np.testing.assert_allclose(np.asarray(pi_s), np.asarray(ref_pi), rtol=2e-2, atol=2e-2)
    np.testing.assert_allclose(np.asarray(pi_d), np.asarray(ref_pi_d), rtol=2e-2, atol=2e-2)

    assert pi.shape == (B, A) and logp.shape == (B,)
    assert pi_s.shape == (B, A) and pi_d.shape == (B, A)
    print("KERNEL_OK")
</pallas_src>

<mosaic_0001>
module attributes {stable_mosaic.version = 11 : i64} {
  func.func @kernel(%arg0: i32, %arg1: memref<2x13xf32, #tpu.memory_space<vmem>>, %arg2: memref<13x256xbf16, #tpu.memory_space<vmem>>, %arg3: memref<1x256xf32, #tpu.memory_space<vmem>>, %arg4: memref<256x256xbf16, #tpu.memory_space<vmem>>, %arg5: memref<1x256xf32, #tpu.memory_space<vmem>>, %arg6: memref<256x256xbf16, #tpu.memory_space<vmem>>, %arg7: memref<1x256xf32, #tpu.memory_space<vmem>>, %arg8: memref<256x4xbf16, #tpu.memory_space<vmem>>, %arg9: memref<1x4xf32, #tpu.memory_space<vmem>>, %arg10: memref<256x4xbf16, #tpu.memory_space<vmem>>, %arg11: memref<1x4xf32, #tpu.memory_space<vmem>>, %arg12: memref<2x4xf32, #tpu.memory_space<vmem>>, %arg13: memref<2x4xf32, #tpu.memory_space<vmem>>, %arg14: memref<2x1xf32, #tpu.memory_space<vmem>>) attributes {dimension_semantics = [#tpu.dimension_semantics<parallel>], iteration_bounds = array<i64: 1>, scalar_prefetch = 0 : i64, scratch_operands = 0 : i64, tpu.core_type = #tpu.core_type<tc>, window_params = [{transform_indices = @transform_0, window_bounds = array<i64: 2, 13>}, {pipeline_mode = #tpu.pipeline_mode<synchronous>, transform_indices = @transform_1, window_bounds = array<i64: 13, 256>}, {pipeline_mode = #tpu.pipeline_mode<synchronous>, transform_indices = @transform_2, window_bounds = array<i64: 1, 256>}, {pipeline_mode = #tpu.pipeline_mode<synchronous>, transform_indices = @transform_3, window_bounds = array<i64: 256, 256>}, {pipeline_mode = #tpu.pipeline_mode<synchronous>, transform_indices = @transform_4, window_bounds = array<i64: 1, 256>}, {pipeline_mode = #tpu.pipeline_mode<synchronous>, transform_indices = @transform_5, window_bounds = array<i64: 256, 256>}, {pipeline_mode = #tpu.pipeline_mode<synchronous>, transform_indices = @transform_6, window_bounds = array<i64: 1, 256>}, {pipeline_mode = #tpu.pipeline_mode<synchronous>, transform_indices = @transform_7, window_bounds = array<i64: 256, 4>}, {pipeline_mode = #tpu.pipeline_mode<synchronous>, transform_indices = @transform_8, window_bounds = array<i64: 1, 4>}, {pipeline_mode = #tpu.pipeline_mode<synchronous>, transform_indices = @transform_9, window_bounds = array<i64: 256, 4>}, {pipeline_mode = #tpu.pipeline_mode<synchronous>, transform_indices = @transform_10, window_bounds = array<i64: 1, 4>}, {transform_indices = @transform_11, window_bounds = array<i64: 2, 4>}, {transform_indices = @transform_12, window_bounds = array<i64: 2, 4>}, {transform_indices = @transform_13, window_bounds = array<i64: 2, 1>}]} {
    %c0 = arith.constant 0 : index
    %c0_0 = arith.constant 0 : index
    %0 = vector.load %arg1[%c0, %c0_0] : memref<2x13xf32, #tpu.memory_space<vmem>>, vector<2x13xf32>
    %1 = arith.truncf %0 : vector<2x13xf32> to vector<2x13xbf16>
    %c0_1 = arith.constant 0 : index
    %c0_2 = arith.constant 0 : index
    %2 = vector.load %arg2[%c0_1, %c0_2] : memref<13x256xbf16, #tpu.memory_space<vmem>>, vector<13x256xbf16>
    %cst = arith.constant dense<0.000000e+00> : vector<2x256xf32>
    %3 = tpu.matmul %1, %2, %cst {dimension_numbers = #tpu.dot_dimension_numbers<[1], [0], [0], [1], [0, 0, 1, 1], [], []>} : vector<2x13xbf16>, vector<13x256xbf16>, vector<2x256xf32> -> vector<2x256xf32>
    %c0_3 = arith.constant 0 : index
    %c0_4 = arith.constant 0 : index
    %4 = vector.load %arg3[%c0_3, %c0_4] : memref<1x256xf32, #tpu.memory_space<vmem>>, vector<1x256xf32>
    %5 = vector.broadcast %4 : vector<1x256xf32> to vector<2x256xf32>
    %6 = arith.addf %3, %5 : vector<2x256xf32>
    %cst_5 = arith.constant 0.000000e+00 : f32
    %7 = vector.broadcast %cst_5 : f32 to vector<2x256xf32>
    %8 = arith.maximumf %6, %7 : vector<2x256xf32>
    %9 = arith.truncf %8 : vector<2x256xf32> to vector<2x256xbf16>
    %c0_6 = arith.constant 0 : index
    %c0_7 = arith.constant 0 : index
    %10 = vector.load %arg4[%c0_6, %c0_7] : memref<256x256xbf16, #tpu.memory_space<vmem>>, vector<256x256xbf16>
    %cst_8 = arith.constant dense<0.000000e+00> : vector<2x256xf32>
    %11 = tpu.matmul %9, %10, %cst_8 {dimension_numbers = #tpu.dot_dimension_numbers<[1], [0], [0], [1], [0, 0, 1, 1], [], []>} : vector<2x256xbf16>, vector<256x256xbf16>, vector<2x256xf32> -> vector<2x256xf32>
    %c0_9 = arith.constant 0 : index
    %c0_10 = arith.constant 0 : index
    %12 = vector.load %arg5[%c0_9, %c0_10] : memref<1x256xf32, #tpu.memory_space<vmem>>, vector<1x256xf32>
    %13 = vector.broadcast %12 : vector<1x256xf32> to vector<2x256xf32>
    %14 = arith.addf %11, %13 : vector<2x256xf32>
    %cst_11 = arith.constant 0.000000e+00 : f32
    %15 = vector.broadcast %cst_11 : f32 to vector<2x256xf32>
    %16 = arith.maximumf %14, %15 : vector<2x256xf32>
    %17 = arith.truncf %16 : vector<2x256xf32> to vector<2x256xbf16>
    %c0_12 = arith.constant 0 : index
    %c0_13 = arith.constant 0 : index
    %18 = vector.load %arg6[%c0_12, %c0_13] : memref<256x256xbf16, #tpu.memory_space<vmem>>, vector<256x256xbf16>
    %cst_14 = arith.constant dense<0.000000e+00> : vector<2x256xf32>
    %19 = tpu.matmul %17, %18, %cst_14 {dimension_numbers = #tpu.dot_dimension_numbers<[1], [0], [0], [1], [0, 0, 1, 1], [], []>} : vector<2x256xbf16>, vector<256x256xbf16>, vector<2x256xf32> -> vector<2x256xf32>
    %c0_15 = arith.constant 0 : index
    %c0_16 = arith.constant 0 : index
    %20 = vector.load %arg7[%c0_15, %c0_16] : memref<1x256xf32, #tpu.memory_space<vmem>>, vector<1x256xf32>
    %21 = vector.broadcast %20 : vector<1x256xf32> to vector<2x256xf32>
    %22 = arith.addf %19, %21 : vector<2x256xf32>
    %cst_17 = arith.constant 0.000000e+00 : f32
    %23 = vector.broadcast %cst_17 : f32 to vector<2x256xf32>
    %24 = arith.maximumf %22, %23 : vector<2x256xf32>
    %25 = arith.truncf %24 : vector<2x256xf32> to vector<2x256xbf16>
    %c0_18 = arith.constant 0 : index
    %c0_19 = arith.constant 0 : index
    %26 = vector.load %arg8[%c0_18, %c0_19] : memref<256x4xbf16, #tpu.memory_space<vmem>>, vector<256x4xbf16>
    %cst_20 = arith.constant dense<0.000000e+00> : vector<2x4xf32>
    %27 = tpu.matmul %25, %26, %cst_20 {dimension_numbers = #tpu.dot_dimension_numbers<[1], [0], [0], [1], [0, 0, 1, 1], [], []>} : vector<2x256xbf16>, vector<256x4xbf16>, vector<2x4xf32> -> vector<2x4xf32>
    %c0_21 = arith.constant 0 : index
    %c0_22 = arith.constant 0 : index
    %28 = vector.load %arg9[%c0_21, %c0_22] : memref<1x4xf32, #tpu.memory_space<vmem>>, vector<1x4xf32>
    %29 = vector.broadcast %28 : vector<1x4xf32> to vector<2x4xf32>
    %30 = arith.addf %27, %29 : vector<2x4xf32>
    %31 = arith.truncf %24 : vector<2x256xf32> to vector<2x256xbf16>
    %c0_23 = arith.constant 0 : index
    %c0_24 = arith.constant 0 : index
    %32 = vector.load %arg10[%c0_23, %c0_24] : memref<256x4xbf16, #tpu.memory_space<vmem>>, vector<256x4xbf16>
    %cst_25 = arith.constant dense<0.000000e+00> : vector<2x4xf32>
    %33 = tpu.matmul %31, %32, %cst_25 {dimension_numbers = #tpu.dot_dimension_numbers<[1], [0], [0], [1], [0, 0, 1, 1], [], []>} : vector<2x256xbf16>, vector<256x4xbf16>, vector<2x4xf32> -> vector<2x4xf32>
    %c0_26 = arith.constant 0 : index
    %c0_27 = arith.constant 0 : index
    %34 = vector.load %arg11[%c0_26, %c0_27] : memref<1x4xf32, #tpu.memory_space<vmem>>, vector<1x4xf32>
    %35 = vector.broadcast %34 : vector<1x4xf32> to vector<2x4xf32>
    %36 = arith.addf %33, %35 : vector<2x4xf32>
    %cst_28 = arith.constant 1.000000e+00 : f32
    %37 = vector.broadcast %cst_28 : f32 to vector<2x4xf32>
    %38 = arith.subf %36, %37 : vector<2x4xf32>
    %cst_29 = arith.constant -2.000000e+01 : f32
    %cst_30 = arith.constant 2.000000e+00 : f32
    %39 = vector.broadcast %cst_29 : f32 to vector<2x4xf32>
    %40 = arith.maximumf %39, %38 : vector<2x4xf32>
    %41 = vector.broadcast %cst_30 : f32 to vector<2x4xf32>
    %42 = arith.minimumf %41, %40 : vector<2x4xf32>
    %c0_31 = arith.constant 0 : index
    %c0_32 = arith.constant 0 : index
    %43 = vector.load %arg12[%c0_31, %c0_32] : memref<2x4xf32, #tpu.memory_space<vmem>>, vector<2x4xf32>
    %44 = math.exp %42 : vector<2x4xf32>
    %cst_33 = arith.constant 1.000000e+00 : f32
    %45 = vector.broadcast %cst_33 : f32 to vector<2x4xf32>
    %46 = arith.mulf %44, %45 : vector<2x4xf32>
    %47 = arith.mulf %46, %43 : vector<2x4xf32>
    %48 = arith.addf %30, %47 : vector<2x4xf32>
    %49 = arith.mulf %43, %43 : vector<2x4xf32>
    %cst_34 = arith.constant -5.000000e-01 : f32
    %50 = vector.broadcast %cst_34 : f32 to vector<2x4xf32>
    %51 = arith.mulf %50, %49 : vector<2x4xf32>
    %cst_35 = arith.constant 0.000000e+00 : f32
    %52 = vector.broadcast %cst_35 : f32 to vector<2x4xf32>
    %53 = arith.addf %42, %52 : vector<2x4xf32>
    %54 = arith.subf %51, %53 : vector<2x4xf32>
    %cst_36 = arith.constant 0.918938517 : f32
    %55 = vector.broadcast %cst_36 : f32 to vector<2x4xf32>
    %56 = arith.subf %54, %55 : vector<2x4xf32>
    %cst_37 = arith.constant dense<0.000000e+00> : vector<2xf32>
    %57 = vector.multi_reduction <add>, %56, %cst_37 [1] : vector<2x4xf32> to vector<2xf32>
    %58 = vector.shape_cast %57 : vector<2xf32> to vector<2x1xf32>
    %cst_38 = arith.constant -2.000000e+00 : f32
    %59 = vector.broadcast %cst_38 : f32 to vector<2x4xf32>
    %60 = arith.mulf %59, %48 : vector<2x4xf32>
    %cst_39 = arith.constant 0.000000e+00 : f32
    %61 = vector.broadcast %cst_39 : f32 to vector<2x4xf32>
    %62 = arith.maximumf %60, %61 : vector<2x4xf32>
    %63 = vector.broadcast %cst_39 : f32 to vector<2x4xf32>
    %64 = arith.subf %60, %63 : vector<2x4xf32>
    %65 = arith.cmpf one, %64, %64 : vector<2x4xf32>
    %66 = vector.broadcast %cst_39 : f32 to vector<2x4xf32>
    %67 = arith.addf %60, %66 : vector<2x4xf32>
    %68 = math.absf %64 : vector<2x4xf32>
    %cst_40 = arith.constant 0.000000e+00 : f32
    %69 = vector.broadcast %cst_40 : f32 to vector<2x4xf32>
    %70 = arith.subf %69, %68 : vector<2x4xf32>
    %71 = math.exp %70 : vector<2x4xf32>
    %72 = math.log1p %71 : vector<2x4xf32>
    %73 = arith.addf %62, %72 : vector<2x4xf32>
    %74 = arith.select %65, %67, %73 : vector<2x4xi1>, vector<2x4xf32>
    %cst_41 = arith.constant 0.693147182 : f32
    %75 = vector.broadcast %cst_41 : f32 to vector<2x4xf32>
    %76 = arith.subf %75, %48 : vector<2x4xf32>
    %77 = arith.subf %76, %74 : vector<2x4xf32>
    %cst_42 = arith.constant 2.000000e+00 : f32
    %78 = vector.broadcast %cst_42 : f32 to vector<2x4xf32>
    %79 = arith.mulf %78, %77 : vector<2x4xf32>
    %cst_43 = arith.constant dense<0.000000e+00> : vector<2xf32>
    %80 = vector.multi_reduction <add>, %79, %cst_43 [1] : vector<2x4xf32> to vector<2xf32>
    %81 = vector.shape_cast %80 : vector<2xf32> to vector<2x1xf32>
    %82 = arith.subf %58, %81 : vector<2x1xf32>
    %c0_44 = arith.constant 0 : index
    %c0_45 = arith.constant 0 : index
    %83 = vector.load %arg14[%c0_44, %c0_45] : memref<2x1xf32, #tpu.memory_space<vmem>>, vector<2x1xf32>
    tpu.vector_store %arg14[%c0_44, %c0_45], %82 {strides = array<i32>} : memref<2x1xf32, #tpu.memory_space<vmem>>, vector<2x1xf32>,
    %84 = math.tanh %48 : vector<2x4xf32>
    %cst_46 = arith.constant 1.000000e+00 : f32
    %85 = vector.broadcast %cst_46 : f32 to vector<2x4xf32>
    %86 = arith.mulf %84, %85 : vector<2x4xf32>
    %c0_47 = arith.constant 0 : index
    %c0_48 = arith.constant 0 : index
    %87 = vector.load %arg13[%c0_47, %c0_48] : memref<2x4xf32, #tpu.memory_space<vmem>>, vector<2x4xf32>
    tpu.vector_store %arg13[%c0_47, %c0_48], %86 {strides = array<i32>} : memref<2x4xf32, #tpu.memory_space<vmem>>, vector<2x4xf32>,
    return
  }
  func.func @transform_0(%arg0: i32) -> (i32, i32) {
    %c0_i32 = arith.constant 0 : i32
    %c0_i32_0 = arith.constant 0 : i32
    return %arg0, %c0_i32 : i32, i32
  }
  func.func @transform_1(%arg0: i32) -> (i32, i32) {
    %c0_i32 = arith.constant 0 : i32
    %c0_i32_0 = arith.constant 0 : i32
    %c0_i32_1 = arith.constant 0 : i32
    return %c0_i32, %c0_i32_0 : i32, i32
  }
  func.func @transform_2(%arg0: i32) -> (i32, i32) {
    %c0_i32 = arith.constant 0 : i32
    %c0_i32_0 = arith.constant 0 : i32
    %c0_i32_1 = arith.constant 0 : i32
    return %c0_i32, %c0_i32_0 : i32, i32
  }
  func.func @transform_3(%arg0: i32) -> (i32, i32) {
    %c0_i32 = arith.constant 0 : i32
    %c0_i32_0 = arith.constant 0 : i32
    %c0_i32_1 = arith.constant 0 : i32
    return %c0_i32, %c0_i32_0 : i32, i32
  }
  func.func @transform_4(%arg0: i32) -> (i32, i32) {
    %c0_i32 = arith.constant 0 : i32
    %c0_i32_0 = arith.constant 0 : i32
    %c0_i32_1 = arith.constant 0 : i32
    return %c0_i32, %c0_i32_0 : i32, i32
  }
  func.func @transform_5(%arg0: i32) -> (i32, i32) {
    %c0_i32 = arith.constant 0 : i32
    %c0_i32_0 = arith.constant 0 : i32
    %c0_i32_1 = arith.constant 0 : i32
    return %c0_i32, %c0_i32_0 : i32, i32
  }
  func.func @transform_6(%arg0: i32) -> (i32, i32) {
    %c0_i32 = arith.constant 0 : i32
    %c0_i32_0 = arith.constant 0 : i32
    %c0_i32_1 = arith.constant 0 : i32
    return %c0_i32, %c0_i32_0 : i32, i32
  }
  func.func @transform_7(%arg0: i32) -> (i32, i32) {
    %c0_i32 = arith.constant 0 : i32
    %c0_i32_0 = arith.constant 0 : i32
    %c0_i32_1 = arith.constant 0 : i32
    return %c0_i32, %c0_i32_0 : i32, i32
  }
  func.func @transform_8(%arg0: i32) -> (i32, i32) {
    %c0_i32 = arith.constant 0 : i32
    %c0_i32_0 = arith.constant 0 : i32
    %c0_i32_1 = arith.constant 0 : i32
    return %c0_i32, %c0_i32_0 : i32, i32
  }
  func.func @transform_9(%arg0: i32) -> (i32, i32) {
    %c0_i32 = arith.constant 0 : i32
    %c0_i32_0 = arith.constant 0 : i32
    %c0_i32_1 = arith.constant 0 : i32
    return %c0_i32, %c0_i32_0 : i32, i32
  }
  func.func @transform_10(%arg0: i32) -> (i32, i32) {
    %c0_i32 = arith.constant 0 : i32
    %c0_i32_0 = arith.constant 0 : i32
    %c0_i32_1 = arith.constant 0 : i32
    return %c0_i32, %c0_i32_0 : i32, i32
  }
  func.func @transform_11(%arg0: i32) -> (i32, i32) {
    %c0_i32 = arith.constant 0 : i32
    %c0_i32_0 = arith.constant 0 : i32
    return %arg0, %c0_i32 : i32, i32
  }
  func.func @transform_12(%arg0: i32) -> (i32, i32) {
    %c0_i32 = arith.constant 0 : i32
    %c0_i32_0 = arith.constant 0 : i32
    return %arg0, %c0_i32 : i32, i32
  }
  func.func @transform_13(%arg0: i32) -> (i32, i32) {
    %c0_i32 = arith.constant 0 : i32
    %c0_i32_0 = arith.constant 0 : i32
    return %arg0, %c0_i32 : i32, i32
  }
}

</mosaic_0001>

<bundles_post_ra>
// kernel: tpu_custom_call.1
= control target key start
LH: loop header
LB: loop body
LE: loop exit
PB: predicated region body
PF: predicated region fallthrough
CT: control target
= control target key end

     0   :  { %19 = vsyncpa [#allocation3], 0  ;;  %s1823_s0 = inlined_call_operand.vmem [shape: f32[2,13], index: 0, kind: input, shape index: {}]   ;;  %s1824_s1 = inlined_call_operand.vmem [shape: bf16[13,256], index: 1, kind: input, shape index: {}]   ;;  %s1825_s2 = inlined_call_operand.hbm [shape: f32[1,256], index: 2, kind: input, shape index: {}]   ;;  %s1826_s3 = inlined_call_operand.vmem [shape: bf16[256,256], index: 3, kind: input, shape index: {}]   ;;  %s1827_s4 = inlined_call_operand.hbm [shape: f32[1,256], index: 4, kind: input, shape index: {}]   ;;  %s1828_s5 = inlined_call_operand.hbm [shape: bf16[256,256], index: 5, kind: input, shape index: {}]   ;;  %s1829_s6 = inlined_call_operand.vmem [shape: f32[1,256], index: 6, kind: input, shape index: {}]   ;;  %s1830_s7 = inlined_call_operand.vmem [shape: bf16[256,4], index: 7, kind: input, shape index: {}]   ;;  %s1831_s8 = inlined_call_operand.vmem [shape: f32[1,4], index: 8, kind: input, shape index: {}]   ;;  %s1832_s9 = inlined_call_operand.vmem [shape: bf16[256,4], index: 9, kind: input, shape index: {}]   ;;  %s1833_s10 = inlined_call_operand.vmem [shape: f32[1,4], index: 10, kind: input, shape index: {}]   ;;  %s1834_s11 = inlined_call_operand.vmem [shape: f32[2,4], index: 11, kind: input, shape index: {}]   ;;  %s1835_s12 = inlined_call_operand.hbm [shape: f32[2,4], index: 12, kind: output, shape index: {0}]   ;;  %s1836_s13 = inlined_call_operand.vmem [shape: f32[2,1], index: 13, kind: output, shape index: {1}]  }
   0x1   :  { %20 = vsyncpa [#allocation6], 0 }
   0x2   :  { %21 = vsyncpa [#allocation4], 0  ;;  %s1468_s25 = smov [#allocation5]   ;;  %s1469_s27 = smov [#allocation2]  }
   0x3   :  { %s44_s26 = sshll.u32 %s1468_s25, 4  ;;  %s32_s28 = sshll.u32 %s1469_s27, 4  ;;  %s45_s26 = int_to_ptr.vmem [resolvable:$true] %s44_s26  ;;  %s33_s28 = int_to_ptr.vmem [resolvable:$true] %s32_s28 }
   0x4   :  { %s1374_s14 = scalar_lea.hbm %s1827_s4, 32 }
   0x5   :  { %p1375_p0 = scmp.ne.s32.totalorder %s1827_s4, %s1374_s14  ;;  %p1378_p1 = scmp.lt.u32.totalorder %s1374_s14, %s1827_s4 }
   0x7   :  { %p1380_p2 = pnand %p1378_p1, %p1375_p0 }
   0x9   :  { %1383 = shalt.err (!%p1380_p2)
}
   0xa   :  { %s1384_s19 = scalar_lea.vmem %s45_s26, 32  ;;  %p1389_p4 = scmp.lt.s32.totalorder %s45_s26, %s45_s26 }
   0xb   :  { %p1385_p3 = scmp.ne.s32.totalorder %s45_s26, %s1384_s19  ;;  %p1390_p5 = scmp.lt.s32.totalorder %s1384_s19, %s1384_s19 }
   0xd   :  { %p1391_p6 = por %p1390_p5, %p1389_p4 }
   0xf   :  { %p1392_p7 = pnand %p1391_p6, %p1385_p3 }
  0x11   :  { %1395 = shalt.err (!%p1392_p7)
}
  0x12   :  { %47 = dma.hbm_to_vmem [thread:$0]  %s1827_s4, 32, %s45_s26, [#allocation6]  }
  0x13   :  { %s1396_s24 = scalar_lea.hbm %s1825_s2, 32 }
  0x14   :  { %p1397_p8 = scmp.ne.s32.totalorder %s1825_s2, %s1396_s24  ;;  %p1400_p9 = scmp.lt.u32.totalorder %s1396_s24, %s1825_s2 }
  0x16   :  { %p1402_p10 = pnand %p1400_p9, %p1397_p8 }
  0x18   :  { %1405 = shalt.err (!%p1402_p10)
}
  0x19   :  { %s1406_s14 = scalar_lea.vmem %s33_s28, 32  ;;  %p1411_p12 = scmp.lt.s32.totalorder %s33_s28, %s33_s28 }
  0x1a   :  { %p1407_p11 = scmp.ne.s32.totalorder %s33_s28, %s1406_s14  ;;  %p1412_p13 = scmp.lt.s32.totalorder %s1406_s14, %s1406_s14 }
  0x1c   :  { %p1413_p0 = por %p1412_p13, %p1411_p12 }
  0x1e   :  { %p1414_p1 = pnand %p1413_p0, %p1407_p11 }
  0x20   :  { %1417 = shalt.err (!%p1414_p1)
}
  0x21   :  { %35 = dma.hbm_to_vmem [thread:$0]  %s1825_s2, 32, %s33_s28, [#allocation3]  }
  0x22   :  { %s1470_s15 = smov [#allocation7]   ;;  %s1418_s19 = scalar_lea.hbm %s1828_s5, 4096 }
  0x23   :  { %s53_s16 = sshll.u32 %s1470_s15, 4  ;;  %p1419_p2 = scmp.ne.s32.totalorder %s1828_s5, %s1418_s19  ;;  %s54_s16 = int_to_ptr.vmem [resolvable:$true] %s53_s16 }
  0x24   :  { %p1422_p3 = scmp.lt.u32.totalorder %s1418_s19, %s1828_s5 }
  0x26   :  { %p1424_p4 = pnand %p1422_p3, %p1419_p2 }
  0x28   :  { %1427 = shalt.err (!%p1424_p4)
}
  0x29   :  { %s1428_s24 = scalar_lea.vmem %s54_s16, 4096  ;;  %p1433_p6 = scmp.lt.s32.totalorder %s54_s16, %s54_s16 }
  0x2a   :  { %p1429_p5 = scmp.ne.s32.totalorder %s54_s16, %s1428_s24  ;;  %p1434_p7 = scmp.lt.s32.totalorder %s1428_s24, %s1428_s24 }
  0x2c   :  { %p1435_p8 = por %p1434_p7, %p1433_p6 }
  0x2e   :  { %p1436_p9 = pnand %p1435_p8, %p1429_p5 }
  0x30   :  { %1439 = shalt.err (!%p1436_p9)
}
  0x31   :  { %s1471_s2 = smov 128   ;;  %s1472_s28 = smov 8  }
  0x32   :  { %59 = dma.hbm_to_vmem [thread:$0]  %s1828_s5, 4096, %s54_s16, [#allocation6], %s1471_s2, %s1471_s2, %s1472_s28  }
  0x33   :  { %1462 = dma.done.wait [#allocation3], 32  }
  0x34   :  { %1463 = vsyncadd [#allocation3], 4294967264 }
  0x35   :  { %1464 = dma.done.wait [#allocation6], 4128  }
  0x36   :  { %1465 = vsyncadd [#allocation6], 4294963168  ;;  %vm110_vm0 = vcmask 1045504   ;;  %v1473_v0 = vmov 0   ;;  %vm111_vm1 = vcmask 1046528   ;;  %v1474_v1 = vmov 65535  }
  0x37   :  { %152 = vmatprep.mubr.bf16.mxu0 %v1473_v0  ;;  %v112_v2 = vsel %vm110_vm0, 4294967295, %v1474_v1  ;;  %v1235_v4 = vld [vmem:[%s1824_s1 + $0x4] ss:$8 sps:$4 sm:$0x7f]   ;;  %v82_v6 = vld [vmem:[%s1823_s0] sm:$0x3] }
  0x38   :  { %v113_v3 = vsel %vm111_vm1, %v112_v2, 0  ;;  %v1237_v5 = vld [vmem:[%s1824_s1] ss:$8 sps:$4 sm:$0x7f]   ;;  %v1238_v8 = vld [vmem:[%s1826_s3 + $0x4] ss:$8 sps:$4 sm:$0xff]   ;;  %v83_v12 = vpack.c.bf16 %v82_v6, %v82_v6  ;;  %v88_v6 = vlaneseq }
  0x39   :  { %v118_v7 = vand.u32 %v1235_v4, %v113_v3  ;;  %v1240_v9 = vld [vmem:[%s1826_s3] ss:$8 sps:$4 sm:$0xff]   ;;  %v115_v10 = vand.u32 %v1237_v5, %v113_v3  ;;  %v1241_v11 = vld [vmem:[%s1826_s3 + $0x14] ss:$8 sps:$4 sm:$0xff]   ;;  %369 = vmatprep.subr.bf16.mxu1 %v1238_v8  ;;  %vm106_vm2 = vcmask 105472   ;;  %vm1026_vm3 = vcmask 25600  }
  0x3a   :  { %370 = vmatpush1.bf16.msra.mxu1 %v1240_v9  ;;  %v1243_v13 = vld [vmem:[%s1826_s3 + $0x10] ss:$8 sps:$4 sm:$0xff]   ;;  %v1244_v14 = vld [vmem:[%s1826_s3 + $0x24] ss:$8 sps:$4 sm:$0xff]   ;;  %v1246_v15 = vld [vmem:[%s1826_s3 + $0x20] ss:$8 sps:$4 sm:$0xff]  }
  0x3b   :  { %120 = vmatprep.subr.bf16.mxu0 %v118_v7  ;;  %371 = vmatprep.subr.bf16.mxu1 %v1241_v11  ;;  %v1247_v16 = vld [vmem:[%s1826_s3 + $0x34] ss:$8 sps:$4 sm:$0xff]   ;;  %v1249_v17 = vld [vmem:[%s1826_s3 + $0x30] ss:$8 sps:$4 sm:$0xff]   ;;  %v1250_v18 = vld [vmem:[%s1826_s3 + $0x44] ss:$8 sps:$4 sm:$0xff]  }
  0x3c   :  { %121 = vmatpush1.bf16.msra.mxu0 %v115_v10  ;;  %v1252_v19 = vld [vmem:[%s1826_s3 + $0x40] ss:$8 sps:$4 sm:$0xff]   ;;  %v1253_v20 = vld [vmem:[%s1826_s3 + $0x54] ss:$8 sps:$4 sm:$0xff]   ;;  %v1255_v21 = vld [vmem:[%s1826_s3 + $0x50] ss:$8 sps:$4 sm:$0xff]  }
  0x3d   :  { %v1256_v22 = vld [vmem:[%s1826_s3 + $0x64] ss:$8 sps:$4 sm:$0xff]   ;;  %v1258_v23 = vld [vmem:[%s1826_s3 + $0x60] ss:$8 sps:$4 sm:$0xff]   ;;  %v1259_v24 = vld [vmem:[%s1826_s3 + $0x74] ss:$8 sps:$4 sm:$0xff]  }
  0x3e   :  { %372 = vmatpush1.bf16.msra.mxu1 %v1243_v13  ;;  %v1261_v25 = vld [vmem:[%s1826_s3 + $0x70] ss:$8 sps:$4 sm:$0xff]   ;;  %v1262_v26 = vld [vmem:[%s1826_s3 + $0x84] ss:$8 sps:$4 sm:$0xff]   ;;  %v1264_v27 = vld [vmem:[%s1826_s3 + $0x80] ss:$8 sps:$4 sm:$0xff]  }
  0x3f   :  { %1082 = vmatmul.mubr.msk.bf16.vlgmr.msra.gmra.mrb[0].mxu0 %vm106_vm2, %v83_v12  ;;  %373 = vmatprep.subr.bf16.mxu1 %v1244_v14  ;;  %v1265_v28 = vld [vmem:[%s1826_s3 + $0x94] ss:$8 sps:$4 sm:$0xff]   ;;  %v1267_v29 = vld [vmem:[%s1826_s3 + $0x90] ss:$8 sps:$4 sm:$0xff]   ;;  %v1268_v30 = vld [vmem:[%s1826_s3 + $0xa4] ss:$8 sps:$4 sm:$0xff]  }
  0x40   :  { %v1270_v31 = vld [vmem:[%s1826_s3 + $0xa0] ss:$8 sps:$4 sm:$0xff]   ;;  %v1271_v32 = vld [vmem:[%s1826_s3 + $0xb4] ss:$8 sps:$4 sm:$0xff]   ;;  %v1273_v33 = vld [vmem:[%s1826_s3 + $0xb0] ss:$8 sps:$4 sm:$0xff]  }
  0x41   :  { %v1274_v34 = vld [vmem:[%s1826_s3 + $0xc4] ss:$8 sps:$4 sm:$0xff]   ;;  %v1276_v35 = vld [vmem:[%s1826_s3 + $0xc0] ss:$8 sps:$4 sm:$0xff]   ;;  %v1277_v36 = vld [vmem:[%s1826_s3 + $0xd4] ss:$8 sps:$4 sm:$0xff]  }
  0x42   :  { %374 = vmatpush1.bf16.msra.mxu1 %v1246_v15  ;;  %v1279_v37 = vld [vmem:[%s1826_s3 + $0xd0] ss:$8 sps:$4 sm:$0xff]   ;;  %v1280_v38 = vld [vmem:[%s1826_s3 + $0xe4] ss:$8 sps:$4 sm:$0xff]   ;;  %v1282_v39 = vld [vmem:[%s1826_s3 + $0xe0] ss:$8 sps:$4 sm:$0xff]  }
  0x43   :  { %375 = vmatprep.subr.bf16.mxu1 %v1247_v16  ;;  %v1283_v40 = vld [vmem:[%s1826_s3 + $0xf4] ss:$8 sps:$4 sm:$0xff]   ;;  %v1285_v41 = vld [vmem:[%s1826_s3 + $0xf0] ss:$8 sps:$4 sm:$0xff]   ;;  %v1286_v42 = vld [vmem:[#allocation7] ss:$8 sps:$4 sm:$0xff]  }
  0x44   :  { %v1288_v43 = vld [vmem:[#allocation7 + $0x4] ss:$8 sps:$4 sm:$0xff]   ;;  %v1291_v44 = vld [vmem:[#allocation7 + $0x14] ss:$8 sps:$4 sm:$0xff]   ;;  %v1289_v45 = vld [vmem:[#allocation7 + $0x10] ss:$8 sps:$4 sm:$0xff]  }
  0x45   :  { %618 = vmatprep.subr.bf16.mxu0 %v1288_v43  ;;  %v1294_v46 = vld [vmem:[#allocation7 + $0x24] ss:$8 sps:$4 sm:$0xff]   ;;  %v1292_v47 = vld [vmem:[#allocation7 + $0x20] ss:$8 sps:$4 sm:$0xff]   ;;  %v1297_v48 = vld [vmem:[#allocation7 + $0x34] ss:$8 sps:$4 sm:$0xff]  }
  0x46   :  { %376 = vmatpush1.bf16.msra.mxu1 %v1249_v17  ;;  %619 = vmatpush1.bf16.msra.mxu0 %v1286_v42  ;;  %v1295_v49 = vld [vmem:[#allocation7 + $0x30] ss:$8 sps:$4 sm:$0xff]   ;;  %v1300_v50 = vld [vmem:[#allocation7 + $0x44] ss:$8 sps:$4 sm:$0xff]   ;;  %v1298_v51 = vld [vmem:[#allocation7 + $0x40] ss:$8 sps:$4 sm:$0xff]  }
  0x47   :  { %377 = vmatprep.subr.bf16.mxu1 %v1250_v18  ;;  %620 = vmatprep.subr.bf16.mxu0 %v1291_v44  ;;  %v1303_v52 = vld [vmem:[#allocation7 + $0x54] ss:$8 sps:$4 sm:$0xff]   ;;  %v1301_v53 = vld [vmem:[#allocation7 + $0x50] ss:$8 sps:$4 sm:$0xff]   ;;  %v1306_v54 = vld [vmem:[#allocation7 + $0x64] ss:$8 sps:$4 sm:$0xff]  }
  0x48   :  { %v1304_v55 = vld [vmem:[#allocation7 + $0x60] ss:$8 sps:$4 sm:$0xff]   ;;  %v1309_v56 = vld [vmem:[#allocation7 + $0x74] ss:$8 sps:$4 sm:$0xff]   ;;  %v1307_v57 = vld [vmem:[#allocation7 + $0x70] ss:$8 sps:$4 sm:$0xff]  }
  0x49   :  { %v1312_v58 = vld [vmem:[#allocation7 + $0x84] ss:$8 sps:$4 sm:$0xff]   ;;  %v1310_v59 = vld [vmem:[#allocation7 + $0x80] ss:$8 sps:$4 sm:$0xff]   ;;  %v1315_v60 = vld [vmem:[#allocation7 + $0x94] ss:$8 sps:$4 sm:$0xff]  }
  0x4a   :  { %378 = vmatpush1.bf16.msra.mxu1 %v1252_v19  ;;  %621 = vmatpush1.bf16.msra.mxu0 %v1289_v45  ;;  %v1313_v61 = vld [vmem:[#allocation7 + $0x90] ss:$8 sps:$4 sm:$0xff]   ;;  %v1318_v62 = vld [vmem:[#allocation7 + $0xa4] ss:$8 sps:$4 sm:$0xff]   ;;  %v1316_v63 = vld [vmem:[#allocation7 + $0xa0] ss:$8 sps:$4 sm:$0xff]  }
  0x4b   :  { %379 = vmatprep.subr.bf16.mxu1 %v1253_v20  ;;  %622 = vmatprep.subr.bf16.mxu0 %v1294_v46  ;;  %v1321_v0 = vld [vmem:[#allocation7 + $0xb4] ss:$8 sps:$4 sm:$0xff]   ;;  %v1319_v1 = vld [vmem:[#allocation7 + $0xb0] ss:$8 sps:$4 sm:$0xff]   ;;  %v1324_v2 = vld [vmem:[#allocation7 + $0xc4] ss:$8 sps:$4 sm:$0xff]  }
  0x4c   :  { %v1322_v3 = vld [vmem:[#allocation7 + $0xc0] ss:$8 sps:$4 sm:$0xff]   ;;  %v1327_v4 = vld [vmem:[#allocation7 + $0xd4] ss:$8 sps:$4 sm:$0xff]   ;;  %v1325_v5 = vld [vmem:[#allocation7 + $0xd0] ss:$8 sps:$4 sm:$0xff]  }
  0x4d   :  { %v89_v7 = vshrl.u32 %v88_v6, 7  ;;  %v86_v9 = vld [vmem:[#allocation2] sm:$0x3]  ;;  %v1364_v6 = vld [vmem:[%s1830_s7 + $0x38] sm:$0xff]  }
  0x4e   :  { %380 = vmatpush1.bf16.msra.mxu1 %v1255_v21  ;;  %623 = vmatpush1.bf16.msra.mxu0 %v1292_v47 }
  0x4f   :  { %381 = vmatprep.subr.bf16.mxu1 %v1256_v22  ;;  %624 = vmatprep.subr.bf16.mxu0 %v1297_v48  ;;  %v1687_v8 = vsub.s32 0, %v89_v7  ;;  %v1689_v10 = vsub.s32 1, %v89_v7  ;;  %v1365_v7 = vld [vmem:[%s1832_s9 + $0x38] sm:$0xff]  }
  0x51   :  { %v91_v11 = vrot.slane %v86_v9, %v1687_v8  ;;  %v95_v12 = vrot.slane %v86_v9, %v1689_v10  ;;  %v446_v9 = vld [vmem:[%s1829_s6] sm:$0x3] }
  0x52   :  { %382 = vmatpush1.bf16.msra.mxu1 %v1258_v23  ;;  %625 = vmatpush1.bf16.msra.mxu0 %v1295_v49  ;;  %v1330_v23 = vld [vmem:[#allocation7 + $0xe4] ss:$8 sps:$4 sm:$0xff]  }
  0x53   :  { %383 = vmatprep.subr.bf16.mxu1 %v1259_v24  ;;  %626 = vmatprep.subr.bf16.mxu0 %v1300_v50  ;;  %v1328_v24 = vld [vmem:[#allocation7 + $0xe0] ss:$8 sps:$4 sm:$0xff]  }
  0x56   :  { %384 = vmatpush1.bf16.msra.mxu1 %v1261_v25  ;;  %627 = vmatpush1.bf16.msra.mxu0 %v1298_v51  ;;  %v1333_v25 = vld [vmem:[#allocation7 + $0xf4] ss:$8 sps:$4 sm:$0xff]  }
  0x57   :  { %385 = vmatprep.subr.bf16.mxu1 %v1262_v26  ;;  %628 = vmatprep.subr.bf16.mxu0 %v1303_v52  ;;  %v1331_v26 = vld [vmem:[#allocation7 + $0xf0] ss:$8 sps:$4 sm:$0xff]   ;;  %v1337_v52 = vld [vmem:[%s1832_s9] sm:$0xff]  }
  0x5a   :  { %386 = vmatpush1.bf16.msra.mxu1 %v1264_v27  ;;  %629 = vmatpush1.bf16.msra.mxu0 %v1301_v53  ;;  %v1334_v27 = vld [vmem:[%s1830_s7 + $0x40] sm:$0xff]  }
  0x5b   :  { %387 = vmatprep.subr.bf16.mxu1 %v1265_v28  ;;  %630 = vmatprep.subr.bf16.mxu0 %v1306_v54  ;;  %v1335_v28 = vld [vmem:[%s1832_s9 + $0x40] sm:$0xff]   ;;  %v1339_v54 = vld [vmem:[%s1832_s9 + $0x48] sm:$0xff]  }
  0x5e   :  { %388 = vmatpush1.bf16.msra.mxu1 %v1267_v29  ;;  %631 = vmatpush1.bf16.msra.mxu0 %v1304_v55  ;;  %v1336_v29 = vld [vmem:[%s1830_s7] sm:$0xff]   ;;  %v1341_v55 = vld [vmem:[%s1832_s9 + $0x8] sm:$0xff]  }
  0x5f   :  { %389 = vmatprep.subr.bf16.mxu1 %v1268_v30  ;;  %632 = vmatprep.subr.bf16.mxu0 %v1309_v56  ;;  %v1338_v30 = vld [vmem:[%s1830_s7 + $0x48] sm:$0xff]   ;;  %v1343_v56 = vld [vmem:[%s1832_s9 + $0x50] sm:$0xff]  }
  0x62   :  { %390 = vmatpush1.bf16.msra.mxu1 %v1270_v31  ;;  %633 = vmatpush1.bf16.msra.mxu0 %v1307_v57  ;;  %v1340_v31 = vld [vmem:[%s1830_s7 + $0x8] sm:$0xff]   ;;  %v1345_v57 = vld [vmem:[%s1832_s9 + $0x10] sm:$0xff]  }
  0x63   :  { %391 = vmatprep.subr.bf16.mxu1 %v1271_v32  ;;  %634 = vmatprep.subr.bf16.mxu0 %v1312_v58  ;;  %v1342_v32 = vld [vmem:[%s1830_s7 + $0x50] sm:$0xff]   ;;  %v1347_v58 = vld [vmem:[%s1832_s9 + $0x58] sm:$0xff]  }
  0x66   :  { %392 = vmatpush1.bf16.msra.mxu1 %v1273_v33  ;;  %635 = vmatpush1.bf16.msra.mxu0 %v1310_v59  ;;  %v1344_v33 = vld [vmem:[%s1830_s7 + $0x10] sm:$0xff]   ;;  %v1349_v59 = vld [vmem:[%s1832_s9 + $0x18] sm:$0xff]  }
  0x67   :  { %393 = vmatprep.subr.bf16.mxu1 %v1274_v34  ;;  %636 = vmatprep.subr.bf16.mxu0 %v1315_v60  ;;  %v1346_v34 = vld [vmem:[%s1830_s7 + $0x58] sm:$0xff]   ;;  %v1351_v60 = vld [vmem:[%s1832_s9 + $0x60] sm:$0xff]  }
  0x6a   :  { %394 = vmatpush1.bf16.msra.mxu1 %v1276_v35  ;;  %637 = vmatpush1.bf16.msra.mxu0 %v1313_v61  ;;  %v1348_v35 = vld [vmem:[%s1830_s7 + $0x18] sm:$0xff]   ;;  %v1353_v61 = vld [vmem:[%s1832_s9 + $0x20] sm:$0xff]  }
  0x6b   :  { %395 = vmatprep.subr.bf16.mxu1 %v1277_v36  ;;  %638 = vmatprep.subr.bf16.mxu0 %v1318_v62  ;;  %v1350_v36 = vld [vmem:[%s1830_s7 + $0x60] sm:$0xff]   ;;  %v1355_v62 = vld [vmem:[%s1832_s9 + $0x68] sm:$0xff]  }
  0x6e   :  { %396 = vmatpush1.bf16.msra.mxu1 %v1279_v37  ;;  %639 = vmatpush1.bf16.msra.mxu0 %v1316_v63  ;;  %v1352_v37 = vld [vmem:[%s1830_s7 + $0x20] sm:$0xff]   ;;  %v1357_v63 = vld [vmem:[%s1832_s9 + $0x28] sm:$0xff]  }
  0x6f   :  { %397 = vmatprep.subr.bf16.mxu1 %v1280_v38  ;;  %640 = vmatprep.subr.bf16.mxu0 %v1321_v0  ;;  %v1354_v38 = vld [vmem:[%s1830_s7 + $0x68] sm:$0xff]   ;;  %v1358_v0 = vld [vmem:[%s1830_s7 + $0x70] sm:$0xff]  }
  0x72   :  { %398 = vmatpush1.bf16.msra.mxu1 %v1282_v39  ;;  %641 = vmatpush1.bf16.msra.mxu0 %v1319_v1  ;;  %v1356_v39 = vld [vmem:[%s1830_s7 + $0x28] sm:$0xff]   ;;  %v1359_v1 = vld [vmem:[%s1832_s9 + $0x70] sm:$0xff]  }
  0x73   :  { %399 = vmatprep.subr.bf16.mxu1 %v1283_v40  ;;  %642 = vmatprep.subr.bf16.mxu0 %v1324_v2  ;;  %v197_v40 = vld [vmem:[#allocation5] sm:$0x3]  ;;  %v1360_v2 = vld [vmem:[%s1830_s7 + $0x30] sm:$0xff]  }
  0x74   :  { %v206_v42 = vrot.slane %v197_v40, %v1689_v10 }
  0x76   :  { %400 = vmatpush1.bf16.msra.mxu1 %v1285_v41  ;;  %643 = vmatpush1.bf16.msra.mxu0 %v1322_v3  ;;  %v202_v41 = vrot.slane %v197_v40, %v1687_v8  ;;  %v1361_v3 = vld [vmem:[%s1832_s9 + $0x30] sm:$0xff]  }
  0x77   :  { %644 = vmatprep.subr.bf16.mxu0 %v1327_v4  ;;  %1183 = vmatprep.subr.bf16.mxu1 %v1334_v27  ;;  %v1362_v4 = vld [vmem:[%s1830_s7 + $0x78] sm:$0xff]  }
  0x7a   :  { %645 = vmatpush1.bf16.msra.mxu0 %v1325_v5  ;;  %v1363_v5 = vld [vmem:[%s1832_s9 + $0x78] sm:$0xff]  }
  0x7b   :  { %646 = vmatprep.subr.bf16.mxu0 %v1330_v23 }
  0x7e   :  { %647 = vmatpush1.bf16.msra.mxu0 %v1328_v24 }
  0x7f   :  { %648 = vmatprep.subr.bf16.mxu0 %v1333_v25 }
  0x82   :  { %649 = vmatpush1.bf16.msra.mxu0 %v1331_v26  ;;  %v1016_v26 = vld [vmem:[%s1834_s11] sm:$0x3] }
  0x83   :  { %1205 = vmatprep.subr.bf16.mxu0 %v1335_v28 }
 0x112   :  { %v154_v13 = vpop.f32.mrb[0].mxu0 }
 0x113   :  { %v155_v14 = vadd.f32 %v154_v13, %v91_v11  ;;  %v156_v15 = vpop.f32.mrb[1].mxu0  ;;  %v451_v11 = vrot.slane %v446_v9, %v1687_v8  ;;  %v1164_v8 = vld [vmem:[%s1833_s10] ss:$0 sm:$0xff] }
 0x114   :  { %v157_v16 = vadd.f32 %v156_v15, %v95_v12  ;;  %v158_v17 = vpop.f32.mrb[2].mxu0  ;;  %v455_v12 = vrot.slane %v446_v9, %v1689_v10 }
 0x115   :  { %v161_v18 = vmax.f32 %v155_v14, 0.0  ;;  %v159_v19 = vpop.f32.mrb[3].mxu0 }
 0x116   :  { %v162_v20 = vmax.f32 %v157_v16, 0.0 }
 0x117   :  { %v163_v22 = vpack.c.bf16 %v161_v18, %v161_v18 }
 0x118   :  { %v164_v21 = vpack.c.bf16 %v162_v20, %v162_v20 }
 0x11a   :  { %401 = vmatprep.mubr.bf16.mxu1 %v164_v21 }
 0x11b   :  { %402 = vmatmul.mubr.bf16.vlgmr.msra.gmra.mrb[0].mxu1 %v163_v22 }
 0x11c   :  { %1184 = vmatpush3.bf16.msra.mxu1 %v1336_v29 }
 0x11d   :  { %1185 = vmatprep.subr.bf16.mxu1 %v1338_v30 }
 0x120   :  { %1186 = vmatpush3.bf16.msra.mxu1 %v1340_v31 }
 0x121   :  { %1187 = vmatprep.subr.bf16.mxu1 %v1342_v32 }
 0x124   :  { %1188 = vmatpush3.bf16.msra.mxu1 %v1344_v33 }
 0x125   :  { %1189 = vmatprep.subr.bf16.mxu1 %v1346_v34  ;;  %v1021_v34 = vmul.f32 %v1016_v26, %v1016_v26 }
 0x128   :  { %1190 = vmatpush3.bf16.msra.mxu1 %v1348_v35 }
 0x129   :  { %1191 = vmatprep.subr.bf16.mxu1 %v1350_v36 }
 0x12c   :  { %1192 = vmatpush3.bf16.msra.mxu1 %v1352_v37  ;;  %v1022_v37 = vmul.f32 -0.5, %v1021_v34 }
 0x12d   :  { %1193 = vmatprep.subr.bf16.mxu1 %v1354_v38 }
 0x130   :  { %1194 = vmatpush3.bf16.msra.mxu1 %v1356_v39 }
 0x131   :  { %1195 = vmatprep.subr.bf16.mxu1 %v1358_v0 }
 0x134   :  { %1196 = vmatpush3.bf16.msra.mxu1 %v1360_v2 }
 0x135   :  { %1197 = vmatprep.subr.bf16.mxu1 %v1362_v4 }
 0x138   :  { %1198 = vmatpush3.bf16.msra.mxu1 %v1364_v6 }
 0x1ee   :  { %v403_v43 = vpop.f32.mrb[0].mxu1 }
 0x1ef   :  { %v404_v44 = vadd.f32 %v403_v43, %v202_v41  ;;  %v405_v45 = vpop.f32.mrb[1].mxu1  ;;  %v1147_v43 = vld [vmem:[%s1831_s8] ss:$0 sm:$0xff]  ;;  %s1475_s8 = smov [#allocation8]  }
 0x1f0   :  { %v406_v46 = vadd.f32 %v405_v45, %v206_v42  ;;  %v407_v47 = vpop.f32.mrb[2].mxu1  ;;  %s1066_s14 = sshll.u32 %s1475_s8, 4  ;;  %s1067_s14 = int_to_ptr.vmem [resolvable:$true] %s1066_s14 }
 0x1f1   :  { %v410_v48 = vmax.f32 %v404_v44, 0.0  ;;  %v408_v49 = vpop.f32.mrb[3].mxu1  ;;  %s1440_s4 = scalar_lea.vmem %s1067_s14, 32  ;;  %p1445_p11 = scmp.lt.s32.totalorder %s1067_s14, %s1067_s14 }
 0x1f2   :  { %v411_v50 = vmax.f32 %v406_v46, 0.0  ;;  %p1441_p10 = scmp.ne.s32.totalorder %s1067_s14, %s1440_s4  ;;  %p1446_p12 = scmp.lt.s32.totalorder %s1440_s4, %s1440_s4 }
 0x1f3   :  { %v412_v53 = vpack.c.bf16 %v410_v48, %v410_v48 }
 0x1f4   :  { %v413_v51 = vpack.c.bf16 %v411_v50, %v411_v50  ;;  %p1447_p13 = por %p1446_p12, %p1445_p11 }
 0x1f6   :  { %650 = vmatprep.mubr.bf16.mxu0 %v413_v51  ;;  %p1448_p0 = pnand %p1447_p13, %p1441_p10 }
 0x1f7   :  { %651 = vmatmul.mubr.bf16.vlgmr.msra.gmra.mrb[4].mxu0 %v412_v53 }
 0x1f8   :  { %1206 = vmatpush3.bf16.msra.mxu0 %v1337_v52 }
 0x1f9   :  { %1207 = vmatprep.subr.bf16.mxu0 %v1339_v54 }
 0x1fc   :  { %1208 = vmatpush3.bf16.msra.mxu0 %v1341_v55 }
 0x1fd   :  { %1209 = vmatprep.subr.bf16.mxu0 %v1343_v56 }
 0x200   :  { %1210 = vmatpush3.bf16.msra.mxu0 %v1345_v57 }
 0x201   :  { %1211 = vmatprep.subr.bf16.mxu0 %v1347_v58 }
 0x204   :  { %1212 = vmatpush3.bf16.msra.mxu0 %v1349_v59 }
 0x205   :  { %1213 = vmatprep.subr.bf16.mxu0 %v1351_v60 }
 0x208   :  { %1214 = vmatpush3.bf16.msra.mxu0 %v1353_v61 }
 0x209   :  { %1215 = vmatprep.subr.bf16.mxu0 %v1355_v62 }
 0x20c   :  { %1216 = vmatpush3.bf16.msra.mxu0 %v1357_v63 }
 0x20d   :  { %1217 = vmatprep.subr.bf16.mxu0 %v1359_v1 }
 0x210   :  { %1218 = vmatpush3.bf16.msra.mxu0 %v1361_v3 }
 0x211   :  { %1219 = vmatprep.subr.bf16.mxu0 %v1363_v5 }
 0x214   :  { %1220 = vmatpush3.bf16.msra.mxu0 %v1365_v7 }
 0x2ca   :  { %v652_v13 = vpop.f32.mrb[4].mxu0 }
 0x2cb   :  { %v653_v14 = vadd.f32 %v652_v13, %v451_v11  ;;  %v654_v15 = vpop.f32.mrb[5].mxu0 }
 0x2cc   :  { %v655_v16 = vadd.f32 %v654_v15, %v455_v12  ;;  %v656_v17 = vpop.f32.mrb[6].mxu0 }
 0x2cd   :  { %v659_v18 = vmax.f32 %v653_v14, 0.0  ;;  %v657_v19 = vpop.f32.mrb[7].mxu0 }
 0x2ce   :  { %v660_v20 = vmax.f32 %v655_v16, 0.0 }
 0x2cf   :  { %v661_v22 = vpack.c.bf16 %v659_v18, %v659_v18 }
 0x2d0   :  { %v662_v21 = vpack.c.bf16 %v660_v20, %v660_v20 }
 0x2d2   :  { %830 = vmatprep.mubr.bf16.mxu1 %v662_v21  ;;  %1005 = vmatprep.mubr.bf16.mxu0 %v662_v21 }
 0x2d3   :  { %831 = vmatmul.mubr.bf16.vlgmr.msra.gmra.mrb[4].mxu1 %v661_v22  ;;  %1006 = vmatmul.mubr.bf16.vlgmr.msra.gmra.mrb[8].mxu0 %v661_v22 }
 0x3a6   :  { %v1199_v23 = vpop.f32.mrb[4].mxu1  ;;  %v1221_v24 = vpop.f32.mrb[8].mxu0 }
 0x3a7   :  { %v1200_v25 = vpop.f32.mrb[5].mxu1  ;;  %v1222_v10 = vpop.f32.mrb[9].mxu0 }
 0x3a8   :  { %v1201_v27 = vadd.f32 %v1200_v25, %v1199_v23  ;;  %v1223_v28 = vadd.f32 %v1222_v10, %v1221_v24  ;;  %v1202_v29 = vpop.f32.mrb[6].mxu1  ;;  %v1224_v30 = vpop.f32.mrb[10].mxu0 }
 0x3a9   :  { %v1203_v31 = vpop.f32.mrb[7].mxu1  ;;  %v1225_v32 = vpop.f32.mrb[11].mxu0 }
 0x3aa   :  { %v1008_v33 = vadd.f32 %v1223_v28, %v1164_v8  ;;  %v833_v45 = vadd.f32 %v1201_v27, %v1147_v43 }
 0x3ac   :  { %v1181_v35 = vadd.f32 -1.0, %v1008_v33 }
 0x3ae   :  { %v1014_v36 = vmax.f32 %v1181_v35, -20.0 }
 0x3b0   :  { %v1015_v38 = vmin.f32 %v1014_v36, 2.0 }
 0x3b2   :  { %v1017_v39 = vmul.f32 1.442695, %v1015_v38  ;;  %v1024_v40 = vsub.f32 %v1022_v37, %v1015_v38 }
 0x3b4   :  { %1366 = vpow2.f32 %v1017_v39  ;;  %v1182_v41 = vadd.f32 -0.9189385, %v1024_v40 }
 0x3b6   :  { %v1027_v42 = vsel %vm1026_vm3, %v1182_v41, 0.0 }
 0x3b7   :  { %1028 = vadd.xlane.f32.xlu0 %v1027_v42 }
 0x3be   :  { %v1367_v44 = vpop.eup %1366 }
 0x3bf   :  { %v1019_v46 = vmul.f32 %v1367_v44, %v1016_v26 }
 0x3c1   :  { %v1020_v47 = vadd.f32 %v1019_v46, %v833_v45 }
 0x3c3   :  { %1368 = vtanh.f32 %v1020_v47  ;;  %v1030_v48 = vmul.f32 -2.0, %v1020_v47  ;;  %v1049_v0 = vsub.f32 0.6931472, %v1020_v47 }
 0x3c5   :  { %v1034_v49 = vand.u32 2147483647, %v1030_v48  ;;  %v1031_v61 = vmax.f32 %v1030_v48, 0.0  ;;  %vm1032_vm5 = vcmp.ne.f32.partialorder %v1030_v48, %v1030_v48 }
 0x3c7   :  { %v1035_v50 = vsub.f32 0.0, %v1034_v49 }
 0x3c9   :  { %v1036_v51 = vmul.f32 1.442695, %v1035_v50 }
 0x3cb   :  { %1370 = vpow2.f32 %v1036_v51 }
 0x3cd   :  { %v1369_v52 = vpop.eup %1368 }
 0x3ce   :  { %1059 = vst.msk [vmem:[#allocation8] sm:$0x3] %vm1026_vm3, %v1369_v52 }
 0x3d5   :  { %v1371_v53 = vpop.eup %1370 }
 0x3d6   :  { %v1038_v54 = vadd.f32 1.0, %v1371_v53  ;;  %v1041_v55 = vmul.f32 -0.5, %v1371_v53  ;;  %v1044_v57 = vand.u32 2147483647, %v1371_v53 }
 0x3d8   :  { %1372 = vlog2.f32 %v1038_v54  ;;  %v1042_v56 = vadd.f32 1.0, %v1041_v55  ;;  %vm1045_vm4 = vcmp.lt.f32.partialorder %v1044_v57, 0.0004427343 }
 0x3da   :  { %v1043_v60 = vmul.f32 %v1371_v53, %v1042_v56 }
 0x3e2   :  { %v1373_v58 = vpop.eup %1372 }
 0x3e3   :  { %v1040_v59 = vmul.f32 0.6931472, %v1373_v58 }
 0x3e5   :  { %v1046_v62 = vsel %vm1045_vm4, %v1043_v60, %v1040_v59 }
 0x3e6   :  { %v1047_v63 = vadd.f32 %v1046_v62, %v1031_v61 }
 0x3e8   :  { %v1048_v1 = vsel %vm1032_vm5, %v1030_v48, %v1047_v63 }
 0x3e9   :  { %v1050_v2 = vsub.f32 %v1049_v0, %v1048_v1 }
 0x3eb   :  { %v1051_v3 = vmul.f32 2.0, %v1050_v2 }
 0x3ed   :  { %v1052_v4 = vsel %vm1026_vm3, %v1051_v3, 0.0 }
 0x3ee   :  { %1053 = vadd.xlane.f32.xlu0 %v1052_v4 }
 0x3ef   :  { %1451 = shalt.err (!%p1448_p0)
}
 0x3f0   :  { %s1452_s26 = scalar_lea.hbm %s1835_s12, 32 }
 0x3f1   :  { %p1453_p1 = scmp.ne.s32.totalorder %s1835_s12, %s1452_s26  ;;  %p1456_p2 = scmp.lt.u32.totalorder %s1452_s26, %s1835_s12 }
 0x3f3   :  { %p1458_p3 = pnand %p1456_p2, %p1453_p1 }
 0x3f5   :  { %1461 = shalt.err (!%p1458_p3)
}
 0x3f6   :  { %1069 = dma.vmem_to_hbm [thread:$0]  %s1067_s14, 32, %s1835_s12, [#allocation4]   ;;  %vm1056_vm6 = vcmask 1024  }
 0x444   :  { %v1029_v5 = vpop.xlane.xlu0 %1028 }
 0x47b   :  { %v1054_v6 = vpop.xlane.xlu0 %1053 }
 0x47c   :  { %v1055_v7 = vsub.f32 %v1029_v5, %v1054_v6 }
 0x47e   :  { %1057 = vst.msk [vmem:[%s1836_s13] sm:$0x3] %vm1056_vm6, %v1055_v7 }
 0x47f   :  { %1466 = dma.done.wait [#allocation4], 32  }
 0x480   :  { %1467 = vsyncadd [#allocation4], 4294967264 }
 0x481   :  { %1077 = vsyncpa [#allocation3], 1 }
 0x482   :  { %1078 = vsyncpa [#allocation6], 1 }
 0x483   :  { %1079 = vsyncpa [#allocation4], 1 }

</bundles_post_ra>
